<compile_context>
chip_gen: v6e
topology: v6e:2x2x1
jax: 0.10.0
libtpu: 0.0.40
codegen_flags: <defaults>
</compile_context>

<pallas_src>
import numpy as np
import jax
import jax.numpy as jnp
from jax.experimental import pallas as pl
from jax.experimental.pallas import tpu as pltpu


def _gaussian_1d(scale):
    """1-D gaussian matching AntiAliasInterpolation2d.__init__ (float64)."""
    sigma = (1.0 / scale - 1.0) / 2.0
    ksize = 2 * round(sigma * 4) + 1
    ka = ksize // 2
    kb = ka - 1 if ksize % 2 == 0 else ka
    mean = (ksize - 1) / 2.0
    g = np.exp(-((np.arange(ksize, dtype=np.float64) - mean) ** 2)
               / (2.0 * sigma ** 2))
    return g / g.sum(), ksize, ka, kb  # outer(g, g) == normalized 2-D kernel


def _projection_matrices(scale, H, W):
    """Banded A (Ho,H), B (W,Wo) with  A @ x @ B == pad + blur + ::stride subsample."""
    g, K, ka, kb = _gaussian_1d(scale)
    stride = int(1.0 / scale)          # same semantics as PyTorch int(1/scale)
    Ho = -(-H // stride)               # == len(range(0, H, stride))
    Wo = -(-W // stride)
    A = np.zeros((Ho, H), dtype=np.float64)
    for i in range(Ho):
        for a in range(K):
            u = i * stride + a - ka    # source row; zero-pad => skip if OOB
            if 0 <= u < H:
                A[i, u] = g[a]
    B = np.zeros((W, Wo), dtype=np.float64)
    for j in range(Wo):
        for b in range(K):
            v = j * stride + b - ka    # source col
            if 0 <= v < W:
                B[v, j] = g[b]
    return A.astype(np.float32), B.astype(np.float32)


def _make_pyramid_kernel(C, H, W, num_scales, batch_cols):
    """Kernel refs: (x, A_0, B_0, ..., A_{S-1}, B_{S-1}, out_0, ..., out_{S-1})."""
    def kernel(*refs):
        x_ref = refs[0]
        mat_refs = refs[1:1 + 2 * num_scales]
        out_refs = refs[1 + 2 * num_scales:]
        x = x_ref[0].astype(jnp.float32)                    # (C, H, W), hoisted
        if batch_cols:
            # Column pass batched over channels: one big matmul per scale.
            xf = x.reshape(C * H, W)                        # layout-free (H%8==0)
            for k in range(num_scales):
                A = mat_refs[2 * k][...]                    # (Ho, H)
                B = mat_refs[2 * k + 1][...]                # (W, Wo)
                Wo = B.shape[1]
                t = jnp.dot(xf, B,
                            preferred_element_type=jnp.float32)      # (C*H, Wo)
                t = t.reshape(C, H, Wo)
                for c in range(C):                          # C small & static
                    y = jnp.dot(A, t[c],
                                preferred_element_type=jnp.float32)  # (Ho, Wo)
                    out_refs[k][0, c, :, :] = y.astype(out_refs[k].dtype)
        else:
            # Fallback (H not a multiple of 8): per-channel on both passes.
            for k in range(num_scales):
                A = mat_refs[2 * k][...]
                B = mat_refs[2 * k + 1][...]
                for c in range(C):
                    t = jnp.dot(x[c], B, preferred_element_type=jnp.float32)
                    y = jnp.dot(A, t, preferred_element_type=jnp.float32)
                    out_refs[k][0, c, :, :] = y.astype(out_refs[k].dtype)
    return kernel


def image_pyramid_pallas(x, scales):
    """All blurred + subsampled pyramid levels (scale != 1) from one read of x."""
    N, C, H, W = x.shape
    num = len(scales)
    itemsize = x.dtype.itemsize

    mats, mat_specs, out_shapes, out_specs = [], [], [], []
    flops = 0
    out_bytes = 0
    for s in scales:
        A, B = _projection_matrices(float(s), H, W)
        Ho, Wo = A.shape[0], B.shape[1]
        mats += [jnp.asarray(A), jnp.asarray(B)]
        mat_specs += [pl.BlockSpec((Ho, H), lambda n: (0, 0)),
                      pl.BlockSpec((W, Wo), lambda n: (0, 0))]
        out_shapes.append(jax.ShapeDtypeStruct((N, C, Ho, Wo), x.dtype))
        out_specs.append(pl.BlockSpec((1, C, Ho, Wo), lambda n: (n, 0, 0, 0)))
        flops += 2 * N * C * (H * W * Wo + Ho * H * Wo)
        out_bytes += N * C * Ho * Wo * itemsize

    # Whole-image (1,C,H,W) slab per grid step; trailing block dims equal the
    # full array dims so the (8,128) divisibility rule holds for any H, W.
    in_specs = [pl.BlockSpec((1, C, H, W), lambda n: (n, 0, 0, 0))] + mat_specs

    # VMEM: double-buffered input + outputs, resident matrices, small headroom.
    x_blk = C * H * W * itemsize
    o_blk = sum(C * sh.shape[2] * sh.shape[3] * itemsize for sh in out_shapes)
    m_bytes = sum(int(m.size) * 4 for m in mats)
    vmem_need = 2 * (x_blk + o_blk) + 2 * m_bytes + (4 << 20)
    vmem_limit = int(min(max(vmem_need, 16 << 20), 100 << 20))

    outs = pl.pallas_call(
        _make_pyramid_kernel(C, H, W, num, batch_cols=(H % 8 == 0)),
        out_shape=tuple(out_shapes),
        grid=(N,),                        # >=2 iterations keeps both v7x TCs busy
        in_specs=in_specs,
        out_specs=tuple(out_specs),
        compiler_params=pltpu.CompilerParams(
            dimension_semantics=("parallel",),
            vmem_limit_bytes=vmem_limit),
        cost_estimate=pl.CostEstimate(
            flops=int(flops),
            transcendentals=0,
            bytes_accessed=int(N * C * H * W * itemsize + out_bytes + m_bytes)),
    )(x, *mats)
    if not isinstance(outs, (tuple, list)):
        outs = (outs,)
    return list(outs)


class ImagePyramide:
    """JAX/Pallas port of modules/model.py::ImagePyramide (forward only)."""

    def __init__(self, scales, num_channels):
        self.scales = list(scales)
        self.num_channels = num_channels

    def __call__(self, x):
        N, C, H, W = x.shape
        assert C == self.num_channels
        blur_scales = [s for s in self.scales if float(s) != 1.0]
        blurred = image_pyramid_pallas(x, blur_scales) if blur_scales else []
        it = iter(blurred)
        out_dict = {}
        for s in self.scales:
            key = 'prediction_' + str(s)   # matches replace('.','-') -> replace('-','.')
            if float(s) == 1.0:
                out_dict[key] = x          # AntiAliasInterpolation2d is identity at scale 1
            else:
                out_dict[key] = next(it)
        return out_dict


def _reference_pyramid_numpy(x_np, scales):
    """float64 ground truth mirroring the PyTorch module (pad -> depthwise conv -> ::s)."""
    N, C, H, W = x_np.shape
    out = {}
    for scale in scales:
        key = 'prediction_' + str(scale)
        if float(scale) == 1.0:
            out[key] = x_np.astype(np.float64)
            continue
        g, K, ka, kb = _gaussian_1d(float(scale))
        stride = int(1.0 / float(scale))
        k2d = np.outer(g, g)
        xp = np.pad(x_np.astype(np.float64),
                    ((0, 0), (0, 0), (ka, kb), (ka, kb)))
        full = np.zeros((N, C, H, W), dtype=np.float64)
        for a in range(K):
            for b in range(K):
                full += k2d[a, b] * xp[:, :, a:a + H, b:b + W]
        out[key] = full[:, :, ::stride, ::stride]
    return out


if __name__ == "__main__":
    key = jax.random.PRNGKey(0)
    x = jax.random.normal(key, (2, 4, 16, 16), dtype=jnp.float32)

    scales = [1, 0.5, 0.25]
    pyramid = ImagePyramide(scales, num_channels=4)

    out = pyramid(x)
    for v in out.values():
        jax.block_until_ready(v)

    # Correctness check vs. a float64 numpy reference of the PyTorch forward.
    # Tolerance leaves headroom for MXU f32 matmul pass/rounding behavior across
    # TPU generations; structural errors (padding / stride / taps) would be O(1).
    ref = _reference_pyramid_numpy(np.asarray(x), scales)
    for scale in scales:
        k = 'prediction_' + str(scale)
        np.testing.assert_allclose(np.asarray(out[k]), ref[k],
                                   rtol=5e-3, atol=5e-3)

    print("KERNEL_OK")
</pallas_src>

<mosaic_0001>
module attributes {stable_mosaic.version = 11 : i64} {
  func.func @kernel(%arg0: i32, %arg1: memref<1x4x16x16xf32, #tpu.memory_space<vmem>>, %arg2: memref<8x16xf32, #tpu.memory_space<vmem>>, %arg3: memref<16x8xf32, #tpu.memory_space<vmem>>, %arg4: memref<4x16xf32, #tpu.memory_space<vmem>>, %arg5: memref<16x4xf32, #tpu.memory_space<vmem>>, %arg6: memref<1x4x8x8xf32, #tpu.memory_space<vmem>>, %arg7: memref<1x4x4x4xf32, #tpu.memory_space<vmem>>) attributes {dimension_semantics = [#tpu.dimension_semantics<parallel>], iteration_bounds = array<i64: 2>, scalar_prefetch = 0 : i64, scratch_operands = 0 : i64, tpu.core_type = #tpu.core_type<tc>, window_params = [{transform_indices = @transform_0, window_bounds = array<i64: 1, 4, 16, 16>}, {pipeline_mode = #tpu.pipeline_mode<synchronous>, transform_indices = @transform_1, window_bounds = array<i64: 8, 16>}, {pipeline_mode = #tpu.pipeline_mode<synchronous>, transform_indices = @transform_2, window_bounds = array<i64: 16, 8>}, {pipeline_mode = #tpu.pipeline_mode<synchronous>, transform_indices = @transform_3, window_bounds = array<i64: 4, 16>}, {pipeline_mode = #tpu.pipeline_mode<synchronous>, transform_indices = @transform_4, window_bounds = array<i64: 16, 4>}, {transform_indices = @transform_5, window_bounds = array<i64: 1, 4, 8, 8>}, {transform_indices = @transform_6, window_bounds = array<i64: 1, 4, 4, 4>}]} {
    %c0 = arith.constant 0 : index
    %c0_0 = arith.constant 0 : index
    %c0_1 = arith.constant 0 : index
    %c0_2 = arith.constant 0 : index
    %0 = vector.load %arg1[%c0, %c0_0, %c0_1, %c0_2] : memref<1x4x16x16xf32, #tpu.memory_space<vmem>>, vector<1x4x16x16xf32>
    %1 = vector.shape_cast %0 : vector<1x4x16x16xf32> to vector<4x16x16xf32>
    %2 = vector.shape_cast %1 : vector<4x16x16xf32> to vector<64x16xf32>
    %c0_3 = arith.constant 0 : index
    %c0_4 = arith.constant 0 : index
    %3 = vector.load %arg2[%c0_3, %c0_4] : memref<8x16xf32, #tpu.memory_space<vmem>>, vector<8x16xf32>
    %c0_5 = arith.constant 0 : index
    %c0_6 = arith.constant 0 : index
    %4 = vector.load %arg3[%c0_5, %c0_6] : memref<16x8xf32, #tpu.memory_space<vmem>>, vector<16x8xf32>
    %cst = arith.constant dense<0.000000e+00> : vector<64x8xf32>
    %5 = tpu.matmul %2, %4, %cst {dimension_numbers = #tpu.dot_dimension_numbers<[1], [0], [0], [1], [0, 0, 1, 1], [], []>} : vector<64x16xf32>, vector<16x8xf32>, vector<64x8xf32> -> vector<64x8xf32>
    %6 = vector.shape_cast %5 : vector<64x8xf32> to vector<4x16x8xf32>
    %7 = vector.extract_strided_slice %6 {offsets = [0, 0, 0], sizes = [1, 16, 8], strides = [1, 1, 1]} : vector<4x16x8xf32> to vector<1x16x8xf32>
    %8 = vector.shape_cast %7 : vector<1x16x8xf32> to vector<16x8xf32>
    %cst_7 = arith.constant dense<0.000000e+00> : vector<8x8xf32>
    %9 = tpu.matmul %3, %8, %cst_7 {dimension_numbers = #tpu.dot_dimension_numbers<[1], [0], [0], [1], [0, 0, 1, 1], [], []>} : vector<8x16xf32>, vector<16x8xf32>, vector<8x8xf32> -> vector<8x8xf32>
    %c0_8 = arith.constant 0 : index
    %c0_9 = arith.constant 0 : index
    %c0_10 = arith.constant 0 : index
    %c0_11 = arith.constant 0 : index
    %10 = vector.load %arg6[%c0_8, %c0_9, %c0_10, %c0_11] : memref<1x4x8x8xf32, #tpu.memory_space<vmem>>, vector<1x1x8x8xf32>
    %11 = vector.shape_cast %10 : vector<1x1x8x8xf32> to vector<8x8xf32>
    %12 = vector.shape_cast %9 : vector<8x8xf32> to vector<1x1x8x8xf32>
    tpu.vector_store %arg6[%c0_8, %c0_9, %c0_10, %c0_11], %12 {strides = array<i32>} : memref<1x4x8x8xf32, #tpu.memory_space<vmem>>, vector<1x1x8x8xf32>,
    %13 = vector.extract_strided_slice %6 {offsets = [1, 0, 0], sizes = [1, 16, 8], strides = [1, 1, 1]} : vector<4x16x8xf32> to vector<1x16x8xf32>
    %14 = vector.shape_cast %13 : vector<1x16x8xf32> to vector<16x8xf32>
    %cst_12 = arith.constant dense<0.000000e+00> : vector<8x8xf32>
    %15 = tpu.matmul %3, %14, %cst_12 {dimension_numbers = #tpu.dot_dimension_numbers<[1], [0], [0], [1], [0, 0, 1, 1], [], []>} : vector<8x16xf32>, vector<16x8xf32>, vector<8x8xf32> -> vector<8x8xf32>
    %c0_13 = arith.constant 0 : index
    %c1 = arith.constant 1 : index
    %c0_14 = arith.constant 0 : index
    %c0_15 = arith.constant 0 : index
    %16 = vector.load %arg6[%c0_13, %c1, %c0_14, %c0_15] : memref<1x4x8x8xf32, #tpu.memory_space<vmem>>, vector<1x1x8x8xf32>
    %17 = vector.shape_cast %16 : vector<1x1x8x8xf32> to vector<8x8xf32>
    %18 = vector.shape_cast %15 : vector<8x8xf32> to vector<1x1x8x8xf32>
    tpu.vector_store %arg6[%c0_13, %c1, %c0_14, %c0_15], %18 {strides = array<i32>} : memref<1x4x8x8xf32, #tpu.memory_space<vmem>>, vector<1x1x8x8xf32>,
    %19 = vector.extract_strided_slice %6 {offsets = [2, 0, 0], sizes = [1, 16, 8], strides = [1, 1, 1]} : vector<4x16x8xf32> to vector<1x16x8xf32>
    %20 = vector.shape_cast %19 : vector<1x16x8xf32> to vector<16x8xf32>
    %cst_16 = arith.constant dense<0.000000e+00> : vector<8x8xf32>
    %21 = tpu.matmul %3, %20, %cst_16 {dimension_numbers = #tpu.dot_dimension_numbers<[1], [0], [0], [1], [0, 0, 1, 1], [], []>} : vector<8x16xf32>, vector<16x8xf32>, vector<8x8xf32> -> vector<8x8xf32>
    %c0_17 = arith.constant 0 : index
    %c2 = arith.constant 2 : index
    %c0_18 = arith.constant 0 : index
    %c0_19 = arith.constant 0 : index
    %22 = vector.load %arg6[%c0_17, %c2, %c0_18, %c0_19] : memref<1x4x8x8xf32, #tpu.memory_space<vmem>>, vector<1x1x8x8xf32>
    %23 = vector.shape_cast %22 : vector<1x1x8x8xf32> to vector<8x8xf32>
    %24 = vector.shape_cast %21 : vector<8x8xf32> to vector<1x1x8x8xf32>
    tpu.vector_store %arg6[%c0_17, %c2, %c0_18, %c0_19], %24 {strides = array<i32>} : memref<1x4x8x8xf32, #tpu.memory_space<vmem>>, vector<1x1x8x8xf32>,
    %25 = vector.extract_strided_slice %6 {offsets = [3, 0, 0], sizes = [1, 16, 8], strides = [1, 1, 1]} : vector<4x16x8xf32> to vector<1x16x8xf32>
    %26 = vector.shape_cast %25 : vector<1x16x8xf32> to vector<16x8xf32>
    %cst_20 = arith.constant dense<0.000000e+00> : vector<8x8xf32>
    %27 = tpu.matmul %3, %26, %cst_20 {dimension_numbers = #tpu.dot_dimension_numbers<[1], [0], [0], [1], [0, 0, 1, 1], [], []>} : vector<8x16xf32>, vector<16x8xf32>, vector<8x8xf32> -> vector<8x8xf32>
    %c0_21 = arith.constant 0 : index
    %c3 = arith.constant 3 : index
    %c0_22 = arith.constant 0 : index
    %c0_23 = arith.constant 0 : index
    %28 = vector.load %arg6[%c0_21, %c3, %c0_22, %c0_23] : memref<1x4x8x8xf32, #tpu.memory_space<vmem>>, vector<1x1x8x8xf32>
    %29 = vector.shape_cast %28 : vector<1x1x8x8xf32> to vector<8x8xf32>
    %30 = vector.shape_cast %27 : vector<8x8xf32> to vector<1x1x8x8xf32>
    tpu.vector_store %arg6[%c0_21, %c3, %c0_22, %c0_23], %30 {strides = array<i32>} : memref<1x4x8x8xf32, #tpu.memory_space<vmem>>, vector<1x1x8x8xf32>,
    %c0_24 = arith.constant 0 : index
    %c0_25 = arith.constant 0 : index
    %31 = vector.load %arg4[%c0_24, %c0_25] : memref<4x16xf32, #tpu.memory_space<vmem>>, vector<4x16xf32>
    %c0_26 = arith.constant 0 : index
    %c0_27 = arith.constant 0 : index
    %32 = vector.load %arg5[%c0_26, %c0_27] : memref<16x4xf32, #tpu.memory_space<vmem>>, vector<16x4xf32>
    %cst_28 = arith.constant dense<0.000000e+00> : vector<64x4xf32>
    %33 = tpu.matmul %2, %32, %cst_28 {dimension_numbers = #tpu.dot_dimension_numbers<[1], [0], [0], [1], [0, 0, 1, 1], [], []>} : vector<64x16xf32>, vector<16x4xf32>, vector<64x4xf32> -> vector<64x4xf32>
    %34 = vector.shape_cast %33 : vector<64x4xf32> to vector<4x16x4xf32>
    %35 = vector.extract_strided_slice %34 {offsets = [0, 0, 0], sizes = [1, 16, 4], strides = [1, 1, 1]} : vector<4x16x4xf32> to vector<1x16x4xf32>
    %36 = vector.shape_cast %35 : vector<1x16x4xf32> to vector<16x4xf32>
    %cst_29 = arith.constant dense<0.000000e+00> : vector<4x4xf32>
    %37 = tpu.matmul %31, %36, %cst_29 {dimension_numbers = #tpu.dot_dimension_numbers<[1], [0], [0], [1], [0, 0, 1, 1], [], []>} : vector<4x16xf32>, vector<16x4xf32>, vector<4x4xf32> -> vector<4x4xf32>
    %c0_30 = arith.constant 0 : index
    %c0_31 = arith.constant 0 : index
    %c0_32 = arith.constant 0 : index
    %c0_33 = arith.constant 0 : index
    %38 = vector.load %arg7[%c0_30, %c0_31, %c0_32, %c0_33] : memref<1x4x4x4xf32, #tpu.memory_space<vmem>>, vector<1x1x4x4xf32>
    %39 = vector.shape_cast %38 : vector<1x1x4x4xf32> to vector<4x4xf32>
    %40 = vector.shape_cast %37 : vector<4x4xf32> to vector<1x1x4x4xf32>
    tpu.vector_store %arg7[%c0_30, %c0_31, %c0_32, %c0_33], %40 {strides = array<i32>} : memref<1x4x4x4xf32, #tpu.memory_space<vmem>>, vector<1x1x4x4xf32>,
    %41 = vector.extract_strided_slice %34 {offsets = [1, 0, 0], sizes = [1, 16, 4], strides = [1, 1, 1]} : vector<4x16x4xf32> to vector<1x16x4xf32>
    %42 = vector.shape_cast %41 : vector<1x16x4xf32> to vector<16x4xf32>
    %cst_34 = arith.constant dense<0.000000e+00> : vector<4x4xf32>
    %43 = tpu.matmul %31, %42, %cst_34 {dimension_numbers = #tpu.dot_dimension_numbers<[1], [0], [0], [1], [0, 0, 1, 1], [], []>} : vector<4x16xf32>, vector<16x4xf32>, vector<4x4xf32> -> vector<4x4xf32>
    %c0_35 = arith.constant 0 : index
    %c1_36 = arith.constant 1 : index
    %c0_37 = arith.constant 0 : index
    %c0_38 = arith.constant 0 : index
    %44 = vector.load %arg7[%c0_35, %c1_36, %c0_37, %c0_38] : memref<1x4x4x4xf32, #tpu.memory_space<vmem>>, vector<1x1x4x4xf32>
    %45 = vector.shape_cast %44 : vector<1x1x4x4xf32> to vector<4x4xf32>
    %46 = vector.shape_cast %43 : vector<4x4xf32> to vector<1x1x4x4xf32>
    tpu.vector_store %arg7[%c0_35, %c1_36, %c0_37, %c0_38], %46 {strides = array<i32>} : memref<1x4x4x4xf32, #tpu.memory_space<vmem>>, vector<1x1x4x4xf32>,
    %47 = vector.extract_strided_slice %34 {offsets = [2, 0, 0], sizes = [1, 16, 4], strides = [1, 1, 1]} : vector<4x16x4xf32> to vector<1x16x4xf32>
    %48 = vector.shape_cast %47 : vector<1x16x4xf32> to vector<16x4xf32>
    %cst_39 = arith.constant dense<0.000000e+00> : vector<4x4xf32>
    %49 = tpu.matmul %31, %48, %cst_39 {dimension_numbers = #tpu.dot_dimension_numbers<[1], [0], [0], [1], [0, 0, 1, 1], [], []>} : vector<4x16xf32>, vector<16x4xf32>, vector<4x4xf32> -> vector<4x4xf32>
    %c0_40 = arith.constant 0 : index
    %c2_41 = arith.constant 2 : index
    %c0_42 = arith.constant 0 : index
    %c0_43 = arith.constant 0 : index
    %50 = vector.load %arg7[%c0_40, %c2_41, %c0_42, %c0_43] : memref<1x4x4x4xf32, #tpu.memory_space<vmem>>, vector<1x1x4x4xf32>
    %51 = vector.shape_cast %50 : vector<1x1x4x4xf32> to vector<4x4xf32>
    %52 = vector.shape_cast %49 : vector<4x4xf32> to vector<1x1x4x4xf32>
    tpu.vector_store %arg7[%c0_40, %c2_41, %c0_42, %c0_43], %52 {strides = array<i32>} : memref<1x4x4x4xf32, #tpu.memory_space<vmem>>, vector<1x1x4x4xf32>,
    %53 = vector.extract_strided_slice %34 {offsets = [3, 0, 0], sizes = [1, 16, 4], strides = [1, 1, 1]} : vector<4x16x4xf32> to vector<1x16x4xf32>
    %54 = vector.shape_cast %53 : vector<1x16x4xf32> to vector<16x4xf32>
    %cst_44 = arith.constant dense<0.000000e+00> : vector<4x4xf32>
    %55 = tpu.matmul %31, %54, %cst_44 {dimension_numbers = #tpu.dot_dimension_numbers<[1], [0], [0], [1], [0, 0, 1, 1], [], []>} : vector<4x16xf32>, vector<16x4xf32>, vector<4x4xf32> -> vector<4x4xf32>
    %c0_45 = arith.constant 0 : index
    %c3_46 = arith.constant 3 : index
    %c0_47 = arith.constant 0 : index
    %c0_48 = arith.constant 0 : index
    %56 = vector.load %arg7[%c0_45, %c3_46, %c0_47, %c0_48] : memref<1x4x4x4xf32, #tpu.memory_space<vmem>>, vector<1x1x4x4xf32>
    %57 = vector.shape_cast %56 : vector<1x1x4x4xf32> to vector<4x4xf32>
    %58 = vector.shape_cast %55 : vector<4x4xf32> to vector<1x1x4x4xf32>
    tpu.vector_store %arg7[%c0_45, %c3_46, %c0_47, %c0_48], %58 {strides = array<i32>} : memref<1x4x4x4xf32, #tpu.memory_space<vmem>>, vector<1x1x4x4xf32>,
    return
  }
  func.func @transform_0(%arg0: i32) -> (i32, i32, i32, i32) {
    %c0_i32 = arith.constant 0 : i32
    %c0_i32_0 = arith.constant 0 : i32
    %c0_i32_1 = arith.constant 0 : i32
    %c0_i32_2 = arith.constant 0 : i32
    return %arg0, %c0_i32, %c0_i32_0, %c0_i32_1 : i32, i32, i32, i32
  }
  func.func @transform_1(%arg0: i32) -> (i32, i32) {
    %c0_i32 = arith.constant 0 : i32
    %c0_i32_0 = arith.constant 0 : i32
    %c0_i32_1 = arith.constant 0 : i32
    return %c0_i32, %c0_i32_0 : i32, i32
  }
  func.func @transform_2(%arg0: i32) -> (i32, i32) {
    %c0_i32 = arith.constant 0 : i32
    %c0_i32_0 = arith.constant 0 : i32
    %c0_i32_1 = arith.constant 0 : i32
    return %c0_i32, %c0_i32_0 : i32, i32
  }
  func.func @transform_3(%arg0: i32) -> (i32, i32) {
    %c0_i32 = arith.constant 0 : i32
    %c0_i32_0 = arith.constant 0 : i32
    %c0_i32_1 = arith.constant 0 : i32
    return %c0_i32, %c0_i32_0 : i32, i32
  }
  func.func @transform_4(%arg0: i32) -> (i32, i32) {
    %c0_i32 = arith.constant 0 : i32
    %c0_i32_0 = arith.constant 0 : i32
    %c0_i32_1 = arith.constant 0 : i32
    return %c0_i32, %c0_i32_0 : i32, i32
  }
  func.func @transform_5(%arg0: i32) -> (i32, i32, i32, i32) {
    %c0_i32 = arith.constant 0 : i32
    %c0_i32_0 = arith.constant 0 : i32
    %c0_i32_1 = arith.constant 0 : i32
    %c0_i32_2 = arith.constant 0 : i32
    return %arg0, %c0_i32, %c0_i32_0, %c0_i32_1 : i32, i32, i32, i32
  }
  func.func @transform_6(%arg0: i32) -> (i32, i32, i32, i32) {
    %c0_i32 = arith.constant 0 : i32
    %c0_i32_0 = arith.constant 0 : i32
    %c0_i32_1 = arith.constant 0 : i32
    %c0_i32_2 = arith.constant 0 : i32
    return %arg0, %c0_i32, %c0_i32_0, %c0_i32_1 : i32, i32, i32, i32
  }
}

</mosaic_0001>

<bundles_post_ra>
// kernel: tpu_custom_call.1
= control target key start
LH: loop header
LB: loop body
LE: loop exit
PB: predicated region body
PF: predicated region fallthrough
CT: control target
= control target key end

     0   :  { %12 = vsyncpa [#allocation3], 0  ;;  %s1935_s0 = inlined_call_operand.hbm [shape: f32[2,4,16,16], index: 0, kind: input, shape index: {}]   ;;  %s1936_s1 = inlined_call_operand.vmem [shape: f32[8,16], index: 1, kind: input, shape index: {}]   ;;  %s1937_s2 = inlined_call_operand.vmem [shape: f32[16,8], index: 2, kind: input, shape index: {}]   ;;  %s1938_s3 = inlined_call_operand.vmem [shape: f32[4,16], index: 3, kind: input, shape index: {}]   ;;  %s1939_s4 = inlined_call_operand.vmem [shape: f32[16,4], index: 4, kind: input, shape index: {}]   ;;  %s1940_s5 = inlined_call_operand.hbm [shape: f32[2,4,8,8], index: 5, kind: output, shape index: {0}]   ;;  %s1941_s6 = inlined_call_operand.hbm [shape: f32[2,4,4,4], index: 6, kind: output, shape index: {1}]  }
   0x1   :  { %14 = vsyncpa [#allocation3 + $0x1], 0 }
   0x2   :  { %15 = vsyncpa [#allocation4], 0 }
   0x3   :  { %17 = vsyncpa [#allocation4 + $0x1], 0 }
   0x4   :  { %18 = vsyncpa [#allocation7], 0 }
   0x5   :  { %20 = vsyncpa [#allocation7 + $0x1], 0  ;;  %s1664_s21 = smov 0   ;;  %s1666_s22 = smov 0  }
   0x6   :  { %s1668_s23 = smov 0   ;;  %s1670_s24 = smov 0  }
   0x7 LB: > { %s1685_s25 = sadd.s32 4294967295, %s1616_s24   ;;  %s1252_s26 = sadd.s32 4294967294, %s1616_s24   ;;  %s1616_s24 = sphi %s1670_s24, %s1956_s24   ;;  %s1612_s23 = sphi %s1668_s23, %s1955_s23   ;;  %s1608_s22 = sphi %s1666_s22, %s1954_s22   ;;  %s1604_s21 = sphi %s1664_s21, %s1953_s21  }
   0x8   : > { %s1689_s27 = sadd.s32 1, %s1616_s24   ;;  %s33_s28 = sadd.s32 1, %s1612_s23 }
   0x9   : > { %s30_s29 = ssub.s32 %s1616_s24, %s1689_s27  ;;  %p40_p0 = scmp.ne.s32.totalorder %s1612_s23, %s1608_s22 }
   0xa   : > { %p31_p1 = scmp.eq.s32.totalorder %s30_s29, 0  ;;  %p41_p2 = scmp.eq.s32.totalorder %s1616_s24, 0 }
   0xb   : > { %p46_p3 = scmp.ne.s32.totalorder %s1608_s22, %s1604_s21  ;;  %p47_p4 = scmp.eq.s32.totalorder %s1685_s25, 0 }
   0xc   : > { %s1701_s30 = scalar_select %p31_p1, %s1612_s23, %s33_s28  }
   0xd   : > { %p1703_p5 = por %p41_p2, %p40_p0  ;;  %p1707_p6 = por %p47_p4, %p46_p3 }
   0xe   : > { %p154_p7 = scmp.eq.s32.totalorder %s1685_s25, 1  ;;  %p160_p8 = scmp.eq.s32.totalorder %s1252_s26, 1 }
   0xf   : > { %s1945_s8 = scalar_select %p1707_p6, 1, 0 }
  0x10   : > { %p1452_p10 = scmp.lt.s32.totalorder %s1616_s24, 2  ;;  %p1714_p11 = por %p154_p7, %p40_p0 }
  0x11   : > { %p1718_p12 = por %p160_p8, %p46_p3  ;;  %s218_s11 = sand.u32 1, %s1612_s23  }
  0x12   : > { %s1946_s9 = scalar_select %p1714_p11, 1, 0 }
  0x13   : > { %s1947_s10 = scalar_select %p1718_p12, 1, 0 }
  0x14   : > { %s1300_s12 = sshll.u32 %s1616_s24, 10  ;;  %s1255_s13 = sshll.u32 %s218_s11, 6 }
  0x15   : > { %s1727_s16 = scalar_lea.hbm %s1935_s0, %s1300_s12  ;;  %s222_s17 = scalar_lea.vmem [#allocation2], %s1255_s13 }
  0x16   : > { %s229_s18 = sshll.u32 %s222_s17, 4  ;;  %p1731_p13 = pnand %p1452_p10, %p1703_p5  ;;  %s1735_s18 = int_to_ptr.vmem [resolvable:$true] %s229_s18 }
  0x17   : > { %s1737_s20 = scalar_lea.sflag [#allocation3], %s218_s11  ;;  %s1494_s26 = scalar_lea.hbm %s1727_s16, 1024 }
  0x18   : > { %p1495_p0 = scmp.ne.s32.totalorder %s1727_s16, %s1494_s26  ;;  %p1496_p1 = pneg %p1731_p13 }
  0x19   : > { %s1499_s12 = scalar_lea.hbm %s1935_s0, 2048  ;;  %p1500_p4 = scmp.lt.s32.totalorder %s1727_s16, %s1935_s0 }
  0x1a   : > { %p1497_p2 = pnand %p1496_p1, %p1495_p0  ;;  %p1501_p5 = scmp.lt.s32.totalorder %s1499_s12, %s1494_s26 }
  0x1c   : > { %p1498_p3 = pneg %p1497_p2  ;;  %p1502_p7 = por %p1501_p5, %p1500_p4 }
  0x1e   : > { %p1503_p8 = pnand %p1502_p7, %p1498_p3 }
  0x20   : > { %1506 = shalt.err (!%p1503_p8)
}
  0x21   : > { %s1507_s11 = scalar_lea.vmem %s1735_s18, 1024  ;;  %s1618_s14 = smov [#allocation2]  }
  0x22   : > { %p1508_p10 = scmp.ne.s32.totalorder %s1735_s18, %s1507_s11  ;;  %s1512_s15 = sshll.u32 %s1618_s14, 4  ;;  %s1513_s15 = int_to_ptr.vmem [resolvable:$false] %s1512_s15 }
  0x23   : > { %s1514_s17 = scalar_lea.vmem %s1513_s15, 2048  ;;  %p1515_p2 = scmp.lt.s32.totalorder %s1735_s18, %s1513_s15 }
  0x24   : > { %p1510_p9 = pnand %p1508_p10, %p1496_p1  ;;  %p1516_p12 = scmp.lt.s32.totalorder %s1514_s17, %s1507_s11 }
  0x26   : > { %p1511_p0 = pneg %p1510_p9  ;;  %p1517_p11 = por %p1516_p12, %p1515_p2 }
  0x28   : > { %p1518_p6 = pnand %p1517_p11, %p1511_p0 }
  0x2a   : > { %1521 = shalt.err (!%p1518_p6)
}
  0x2b   : > { %s1619_s26 = smov 128   ;;  %s1620_s28 = smov 8  }
  0x2c   : > { %1444 = dma.hbm_to_vmem [thread:$0]  (!%p1731_p13), %s1727_s16, 1024, %s1735_s18, %s1737_s20, %s1619_s26, %s1619_s26, %s1620_s28  }
  0x2d   : > { %p1258_p9 = scmp.ge.s32.totalorder %s1616_s24, 1  ;;  %p237_p1 = scmp.lt.s32.totalorder %s1616_s24, 3 }
  0x2f   : > { %p238_p3 = pnand %p1258_p9, %p237_p1 }
  0x30   : > { %s1761_s29 = sand.u32 (!%p238_p3), 1, %s1608_s22   ;;  %p1949_p6 = scmp.ne.s32.totalorder (!%p238_p3), %s1945_s8, 0 }
  0x31   : > { %241 = sbr.rel (%p238_p3) target bundleno = 502 (0x1f6), region = 40  ;;  %s1259_s12 = sshll.u32 (!%p238_p3), %s1761_s29, 6 }
  0x32   : > { %s244_s7 = scalar_lea.sflag (!%p238_p3), [#allocation3], %s1761_s29  ;;  %s247_s13 = scalar_lea.vmem (!%p238_p3), [#allocation2], %s1259_s12 }
  0x36   : > { %1591 = dma.done.wait (%p1949_p6), %s244_s7, 1024  }
  0x37   : > { %1593 = vsyncadd (%p1949_p6), %s244_s7, 4294966272  ;;  %vm292_vm0 = vcmask 130048   ;;  %v291_v0 = vld [vmem:[%s1937_s2 + $0x8] sm:$0xff]  ;;  %v290_v1 = vld [vmem:[%s1937_s2] sm:$0xff]  ;;  %v1621_v12 = vmov 0.0   ;;  %vm1622_vm1 = vmmov 0  }
  0x38   : > { %v281_v2 = vld [vmem:[%s247_s13] sm:$0xff]  ;;  %1347 = vmatprep.subr.mxu0 %v291_v0  ;;  %v282_v3 = vld [vmem:[%s247_s13 + $0x8] sm:$0xff]  ;;  %v283_v5 = vld [vmem:[%s247_s13 + $0x10] sm:$0xff]  ;;  %1363 = vmatprep.subr.mxu1 %v1621_v12  ;;  %s1260_s7 = sshll.u32 %s1761_s29, 5  ;;  %vm495_vm2 = vcmask 64512   ;;  %s1301_s18 = sshll.u32 %s1685_s25, 9 }
  0x39   : > { %1351 = vmatprep.mubr.msk.f32.mxu0 %vm292_vm0, %v281_v2  ;;  %1348 = vmatpush3.msra.mxu0 %v291_v0  ;;  %v715_v4 = vld [vmem:[%s1939_s4 + $0x8] sm:$0xff]  ;;  %v714_v6 = vld [vmem:[%s1939_s4] sm:$0xff]  ;;  %v284_v7 = vld [vmem:[%s247_s13 + $0x18] sm:$0xff]  ;;  %s1261_s19 = sshll.u32 %s1761_s29, 4  ;;  %s1854_s14 = scalar_lea.hbm %s1940_s5, %s1301_s18  ;;  %vm894_vm3 = vcmask 27648  }
  0x3a   : > { %1349 = vmatprep.subr.mxu0 %v290_v1  ;;  %v285_v8 = vld [vmem:[%s247_s13 + $0x20] sm:$0xff]  ;;  %v286_v9 = vld [vmem:[%s247_s13 + $0x28] sm:$0xff]  ;;  %v287_v10 = vld [vmem:[%s247_s13 + $0x30] sm:$0xff]  ;;  %1367 = vmatprep.mubr.msk.f32.mxu1 %vm1622_vm1, %v1621_v12  ;;  %s1113_s8 = scalar_lea.sflag [#allocation4], %s1761_s29  ;;  %p1950_p12 = scmp.ne.s32.totalorder %s1946_s9, 0 }
  0x3b   : > { %1350 = vmatpush3.msra.mxu0 %v290_v1  ;;  %v288_v11 = vld [vmem:[%s247_s13 + $0x38] sm:$0xff]  ;;  %v289_v14 = vld [vmem:[%s1936_s1] sm:$0xff]  ;;  %s273_s13 = scalar_lea.vmem [#allocation5], %s1260_s7  ;;  %s1623_s17 = smov [#allocation5]  }
  0x3c   : > { %1352 = vmatmul.mubr.msk.f32.vlgmr.msra.gmra.mxu0 %vm292_vm0, %v282_v3  ;;  %1391 = vmatprep.subr.mxu0 %v715_v4  ;;  %v713_v23 = vld [vmem:[%s1938_s3] sm:$0xf]  ;;  %s1131_s16 = sshll.u32 %s273_s13, 4  ;;  %s1526_s26 = sshll.u32 %s1623_s17, 4  ;;  %s1847_s16 = int_to_ptr.vmem [resolvable:$true] %s1131_s16  ;;  %s1527_s26 = int_to_ptr.vmem [resolvable:$false] %s1526_s26 }
  0x3d   : > { %1392 = vmatpush3.msra.mxu0 %v715_v4  ;;  %1354 = vmatprep.mubr.msk.f32.mxu0 %vm292_vm0, %v283_v5  ;;  %s1522_s15 = scalar_lea.vmem %s1847_s16, 512  ;;  %s1528_s28 = scalar_lea.vmem %s1527_s26, 1024 }
  0x3e   : > { %1393 = vmatprep.subr.mxu0 %v714_v6  ;;  %p1523_p11 = scmp.ne.s32.totalorder %s1847_s16, %s1522_s15  ;;  %p1529_p5 = scmp.lt.s32.totalorder %s1847_s16, %s1527_s26 }
  0x3f   : > { %1394 = vmatpush3.msra.mxu0 %v714_v6  ;;  %p1530_p7 = scmp.lt.s32.totalorder %s1528_s28, %s1522_s15 }
  0x40   : > { %1355 = vmatmul.mubr.msk.f32.gmra.mxu0 %vm292_vm0, %v284_v7  ;;  %p1524_p13 = pnand %p1523_p11, %p1950_p12 }
  0x41   : > { %1357 = vmatprep.mubr.msk.f32.mxu0 %vm292_vm0, %v285_v8  ;;  %p1531_p8 = por %p1530_p7, %p1529_p5 }
  0x42   : > { %p1525_p4 = pneg %p1524_p13 }
  0x44   : > { %1358 = vmatmul.mubr.msk.f32.gmra.mxu0 %vm292_vm0, %v286_v9  ;;  %p1532_p10 = pnand %p1531_p8, %p1525_p4 }
  0x45   : > { %1360 = vmatprep.mubr.msk.f32.mxu0 %vm292_vm0, %v287_v10 }
  0x48   : > { %1361 = vmatmul.mubr.msk.f32.gmra.mxu0 %vm292_vm0, %v288_v11 }
  0x49   : > { %1395 = vmatprep.mubr.msk.f32.mxu0 %vm292_vm0, %v281_v2 }
  0x4c   : > { %1396 = vmatmul.mubr.msk.f32.vlgmr.msra.gmra.mxu0 %vm292_vm0, %v282_v3 }
  0x4d   : > { %1398 = vmatprep.mubr.msk.f32.mxu0 %vm292_vm0, %v283_v5 }
  0x50   : > { %1399 = vmatmul.mubr.msk.f32.gmra.mxu0 %vm292_vm0, %v284_v7 }
  0x51   : > { %1401 = vmatprep.mubr.msk.f32.mxu0 %vm292_vm0, %v285_v8 }
  0x54   : > { %1402 = vmatmul.mubr.msk.f32.gmra.mxu0 %vm292_vm0, %v286_v9 }
  0x55   : > { %1404 = vmatprep.mubr.msk.f32.mxu0 %vm292_vm0, %v287_v10 }
  0x58   : > { %1405 = vmatmul.mubr.msk.f32.gmra.mxu0 %vm292_vm0, %v288_v11 }
  0xfc   : > { %v1353_v13 = vpop.f32.mrf.mxu0 }
  0xfd   : > { %1364 = vmatpush3.msra.mxu1 %v1353_v13 }
  0xfe   : > { %v383_v15 = vpop.f32.mrf.mxu0  ;;  %1365 = vmatprep.subr.mxu1 %v1621_v12 }
  0xff   : > { %1366 = vmatpush3.msra.mxu1 %v383_v15 }
 0x100   : > { %v1356_v16 = vpop.f32.mrf.mxu0  ;;  %1368 = vmatmul.mubr.msk.f32.vlgmr.msra.gmra.mxu1 %vm292_vm0, %v289_v14  ;;  %1370 = vmatprep.subr.mxu1 %v1621_v12 }
 0x101   : > { %1371 = vmatpush3.msra.mxu1 %v1356_v16  ;;  %1374 = vmatprep.mubr.msk.f32.mxu1 %vm1622_vm1, %v1621_v12 }
 0x102   : > { %v393_v17 = vpop.f32.mrf.mxu0  ;;  %1372 = vmatprep.subr.mxu1 %v1621_v12 }
 0x103   : > { %1373 = vmatpush3.msra.mxu1 %v393_v17 }
 0x104   : > { %v1359_v18 = vpop.f32.mrf.mxu0  ;;  %1375 = vmatmul.mubr.msk.f32.vlgmr.msra.gmra.mxu1 %vm292_vm0, %v289_v14  ;;  %1377 = vmatprep.subr.mxu1 %v1621_v12 }
 0x105   : > { %1378 = vmatpush3.msra.mxu1 %v1359_v18  ;;  %1381 = vmatprep.mubr.msk.f32.mxu1 %vm1622_vm1, %v1621_v12 }
 0x106   : > { %v403_v19 = vpop.f32.mrf.mxu0  ;;  %1379 = vmatprep.subr.mxu1 %v1621_v12 }
 0x107   : > { %1380 = vmatpush3.msra.mxu1 %v403_v19 }
 0x108   : > { %v1362_v20 = vpop.f32.mrf.mxu0  ;;  %1382 = vmatmul.mubr.msk.f32.vlgmr.msra.gmra.mxu1 %vm292_vm0, %v289_v14  ;;  %1384 = vmatprep.subr.mxu1 %v1621_v12 }
 0x109   : > { %1385 = vmatpush3.msra.mxu1 %v1362_v20  ;;  %1388 = vmatprep.mubr.msk.f32.mxu1 %vm1622_vm1, %v1621_v12 }
 0x10a   : > { %v413_v21 = vpop.f32.mrf.mxu0  ;;  %1386 = vmatprep.subr.mxu1 %v1621_v12 }
 0x10b   : > { %1387 = vmatpush3.msra.mxu1 %v413_v21 }
 0x10c   : > { %1389 = vmatmul.mubr.msk.f32.vlgmr.msra.gmra.mxu1 %vm292_vm0, %v289_v14  ;;  %v1397_v22 = vpop.f32.mrf.mxu0  ;;  %1407 = vmatprep.subr.mxu1 %v1621_v12 }
 0x10d   : > { %1408 = vmatpush3.msra.mxu1 %v1397_v22  ;;  %1411 = vmatprep.mubr.msk.f32.mxu1 %vm1622_vm1, %v1621_v12 }
 0x10e   : > { %v782_v24 = vpop.f32.mrf.mxu0  ;;  %1409 = vmatprep.subr.mxu1 %v1621_v12 }
 0x10f   : > { %1410 = vmatpush3.msra.mxu1 %v782_v24 }
 0x110   : > { %v1400_v25 = vpop.f32.mrf.mxu0  ;;  %1412 = vmatmul.mubr.msk.f32.vlgmr.msra.gmra.mxu1 %vm292_vm0, %v713_v23  ;;  %1414 = vmatprep.subr.mxu1 %v1621_v12 }
 0x111   : > { %1415 = vmatpush3.msra.mxu1 %v1400_v25  ;;  %1418 = vmatprep.mubr.msk.f32.mxu1 %vm1622_vm1, %v1621_v12 }
 0x112   : > { %v792_v26 = vpop.f32.mrf.mxu0  ;;  %1416 = vmatprep.subr.mxu1 %v1621_v12 }
 0x113   : > { %1417 = vmatpush3.msra.mxu1 %v792_v26 }
 0x114   : > { %v1403_v27 = vpop.f32.mrf.mxu0  ;;  %1419 = vmatmul.mubr.msk.f32.vlgmr.msra.gmra.mxu1 %vm292_vm0, %v713_v23  ;;  %1421 = vmatprep.subr.mxu1 %v1621_v12 }
 0x115   : > { %1422 = vmatpush3.msra.mxu1 %v1403_v27  ;;  %1425 = vmatprep.mubr.msk.f32.mxu1 %vm1622_vm1, %v1621_v12 }
 0x116   : > { %v802_v28 = vpop.f32.mrf.mxu0  ;;  %1423 = vmatprep.subr.mxu1 %v1621_v12 }
 0x117   : > { %1424 = vmatpush3.msra.mxu1 %v802_v28 }
 0x118   : > { %v1406_v29 = vpop.f32.mrf.mxu0  ;;  %1426 = vmatmul.mubr.msk.f32.vlgmr.msra.gmra.mxu1 %vm292_vm0, %v713_v23  ;;  %1428 = vmatprep.subr.mxu1 %v1621_v12 }
 0x119   : > { %1429 = vmatpush3.msra.mxu1 %v1406_v29  ;;  %1432 = vmatprep.mubr.msk.f32.mxu1 %vm1622_vm1, %v1621_v12 }
 0x11a   : > { %v812_v30 = vpop.f32.mrf.mxu0  ;;  %1430 = vmatprep.subr.mxu1 %v1621_v12 }
 0x11b   : > { %1431 = vmatpush3.msra.mxu1 %v812_v30 }
 0x11c   : > { %1433 = vmatmul.mubr.msk.f32.vlgmr.msra.gmra.mxu1 %vm292_vm0, %v713_v23 }
 0x1c0   : > { %v491_v31 = vpop.f32.mrf.mxu1 }
 0x1c1   : > { %496 = vst.msk [vmem:[%s273_s13] sm:$0xff] %vm495_vm2, %v491_v31 }
 0x1c2   : > { %v1369_v32 = vpop.f32.mrf.mxu1 }
 0x1c4   : > { %v563_v33 = vpop.f32.mrf.mxu1 }
 0x1c5   : > { %1272 = vst.msk [vmem:[%s273_s13 + $0x8] sm:$0xff] %vm495_vm2, %v563_v33 }
 0x1c6   : > { %v1376_v34 = vpop.f32.mrf.mxu1 }
 0x1c8   : > { %v635_v35 = vpop.f32.mrf.mxu1 }
 0x1c9   : > { %1274 = vst.msk [vmem:[%s273_s13 + $0x10] sm:$0xff] %vm495_vm2, %v635_v35 }
 0x1ca   : > { %v1383_v36 = vpop.f32.mrf.mxu1 }
 0x1cc   : > { %v707_v37 = vpop.f32.mrf.mxu1 }
 0x1cd   : > { %1276 = vst.msk [vmem:[%s273_s13 + $0x18] sm:$0xff] %vm495_vm2, %v707_v37 }
 0x1ce   : > { %v1390_v38 = vpop.f32.mrf.mxu1 }
 0x1cf   : > { %1535 = shalt.err (!%p1532_p10)
}
 0x1d0   : > { %s1536_s12 = scalar_lea.hbm %s1854_s14, 512  ;;  %s1540_s18 = scalar_lea.hbm %s1940_s5, 1024 }
 0x1d1   : > { %p1537_p0 = scmp.ne.s32.totalorder %s1854_s14, %s1536_s12  ;;  %p1541_p1 = scmp.lt.s32.totalorder %s1854_s14, %s1940_s5 }
 0x1d2   : > { %p1542_p3 = scmp.lt.s32.totalorder %s1540_s18, %s1536_s12 }
 0x1d3   : > { %p1538_p2 = pnand %p1537_p0, %p1950_p12 }
 0x1d4   : > { %p1543_p6 = por %p1542_p3, %p1541_p1 }
 0x1d5   : > { %p1539_p9 = pneg %p1538_p2 }
 0x1d7   : > { %p1544_p11 = pnand %p1543_p6, %p1539_p9 }
 0x1d9   : > { %1547 = shalt.err (!%p1544_p11)
}
 0x1da   : > { %s1624_s15 = smov 128   ;;  %s1625_s17 = smov 8   ;;  %v890_v39 = vpop.f32.mrf.mxu1 }
 0x1db   : > { %1437 = dma.vmem_to_hbm [thread:$0]  (%p1950_p12), %s1847_s16, 512, %s1854_s14, %s1113_s8, %s1624_s15, %s1624_s15, %s1625_s17  }
 0x1dc   : > { %s280_s26 = scalar_lea.vmem [#allocation6], %s1261_s19  ;;  %v1413_v40 = vpop.f32.mrf.mxu1  ;;  %s1302_s12 = sshll.u32 %s1685_s25, 8 }
 0x1dd   : > { %895 = vst.msk [vmem:[%s280_s26] sm:$0xf] %vm894_vm3, %v890_v39  ;;  %s1147_s28 = sshll.u32 %s280_s26, 4  ;;  %s1891_s14 = scalar_lea.hbm %s1941_s6, %s1302_s12  ;;  %s1885_s28 = int_to_ptr.vmem [resolvable:$true] %s1147_s28 }
 0x1de   : > { %v962_v41 = vpop.f32.mrf.mxu1  ;;  %s1118_s8 = scalar_lea.sflag [#allocation7], %s1761_s29  ;;  %s1548_s25 = scalar_lea.vmem %s1885_s28, 256 }
 0x1df   : > { %1287 = vst.msk [vmem:[%s280_s26 + $0x4] sm:$0xf] %vm894_vm3, %v962_v41  ;;  %p1549_p13 = scmp.ne.s32.totalorder %s1885_s28, %s1548_s25  ;;  %s1626_s7 = smov [#allocation6]  }
 0x1e0   : > { %v1420_v42 = vpop.f32.mrf.mxu1  ;;  %s1552_s13 = sshll.u32 %s1626_s7, 4  ;;  %s1553_s13 = int_to_ptr.vmem [resolvable:$false] %s1552_s13 }
 0x1e1   : > { %p1550_p4 = pnand %p1549_p13, %p1950_p12  ;;  %s1554_s18 = scalar_lea.vmem %s1553_s13, 512 }
 0x1e2   : > { %v1034_v43 = vpop.f32.mrf.mxu1  ;;  %p1555_p7 = scmp.lt.s32.totalorder %s1885_s28, %s1553_s13  ;;  %p1556_p8 = scmp.lt.s32.totalorder %s1554_s18, %s1548_s25 }
 0x1e3   : > { %1289 = vst.msk [vmem:[%s280_s26 + $0x8] sm:$0xf] %vm894_vm3, %v1034_v43  ;;  %p1551_p5 = pneg %p1550_p4 }
 0x1e4   : > { %v1427_v44 = vpop.f32.mrf.mxu1  ;;  %p1557_p10 = por %p1556_p8, %p1555_p7 }
 0x1e6   : > { %v1106_v45 = vpop.f32.mrf.mxu1  ;;  %p1558_p0 = pnand %p1557_p10, %p1551_p5 }
 0x1e7   : > { %1291 = vst.msk [vmem:[%s280_s26 + $0xc] sm:$0xf] %vm894_vm3, %v1106_v45 }
 0x1e8   : > { %v1434_v46 = vpop.f32.mrf.mxu1 }
 0x1e9   : > { %1561 = shalt.err (!%p1558_p0)
}
 0x1ea   : > { %s1562_s20 = scalar_lea.hbm %s1891_s14, 256  ;;  %s1566_s17 = scalar_lea.hbm %s1941_s6, 512 }
 0x1eb   : > { %p1563_p2 = scmp.ne.s32.totalorder %s1891_s14, %s1562_s20  ;;  %p1567_p3 = scmp.lt.s32.totalorder %s1891_s14, %s1941_s6 }
 0x1ec   : > { %p1568_p6 = scmp.lt.s32.totalorder %s1566_s17, %s1562_s20 }
 0x1ed   : > { %p1564_p9 = pnand %p1563_p2, %p1950_p12 }
 0x1ee   : > { %p1569_p11 = por %p1568_p6, %p1567_p3 }
 0x1ef   : > { %p1565_p1 = pneg %p1564_p9 }
 0x1f1   : > { %p1570_p13 = pnand %p1569_p11, %p1565_p1 }
 0x1f3   : > { %1573 = shalt.err (!%p1570_p13)
}
 0x1f4   : > { %s1627_s16 = smov 64   ;;  %s1628_s19 = smov 4  }
 0x1f5   : > { %1438 = dma.vmem_to_hbm [thread:$0]  (%p1950_p12), %s1885_s28, 256, %s1891_s14, %s1118_s8, %s1627_s16, %s1627_s16, %s1628_s19  }
 0x1f6 PF: > { %s1162_s25 = sand.u32 1, %s1604_s21   ;;  %p1951_p4 = scmp.ne.s32.totalorder %s1947_s10, 0 }
 0x1f7   : > { %p1952_p5 = scmp.ge.s32.totalorder %s1616_s24, 2  ;;  %s1163_s7 = scalar_lea.sflag [#allocation4], %s1162_s25 }
 0x1f9   : > { %p1446_p7 = pnand %p1952_p5, %p1951_p4 }
 0x1fb   : > { %p1447_p8 = pneg %p1446_p7 }
 0x1fd   : > { %1595 = dma.done.wait (%p1447_p8), %s1163_s7, 512  }
 0x1fe   : > { %1597 = vsyncadd (%p1447_p8), %s1163_s7, 4294966784  ;;  %s1172_s13 = scalar_lea.sflag [#allocation7], %s1162_s25 }
 0x1ff   : > { %1599 = dma.done.wait (%p1447_p8), %s1172_s13, 256  }
 0x200   : > { %1601 = vsyncadd (%p1447_p8), %s1172_s13, 4294967040  ;;  %p23_p12 = scmp.ge.s32.totalorder %s1689_s27, 4   ;;  %s1953_s21 = smov %s1608_s22 }
 0x201   : > { %s1954_s22 = smov %s1612_s23  ;;  %s1955_s23 = smov %s1701_s30 }
 0x202   : > { %s1956_s24 = smov %s1689_s27  ;;  %25 = sbr.rel (!%p23_p12) target bundleno = 7 (0x7), region = 108 }
 0x207   :  { %1177 = vsyncpa [#allocation3], 1 }
 0x208   :  { %1179 = vsyncpa [#allocation3 + $0x1], 1 }
 0x209   :  { %1180 = vsyncpa [#allocation4], 1 }
 0x20a   :  { %1182 = vsyncpa [#allocation4 + $0x1], 1 }
 0x20b   :  { %1183 = vsyncpa [#allocation7], 1 }
 0x20c   :  { %1185 = vsyncpa [#allocation7 + $0x1], 1 }

</bundles_post_ra>
